<compile_context>
chip_gen: v6e
topology: v6e:2x2x1
jax: 0.10.0
libtpu: 0.0.40
codegen_flags: <defaults>
</compile_context>

<pallas_src>
import functools

import numpy as np
import jax
import jax.numpy as jnp
from jax.experimental import pallas as pl
from jax.experimental.pallas import tpu as pltpu


# ----------------------------------------------------------------------------
# Fused kernel: im2col-along-kh scratch fill + single MXU matmul + bias + ReLU.
# ----------------------------------------------------------------------------
def _dense_block_kernel(x_ref, band_ref, bias_ref, o_ref, xs_ref,
                        *, H, W, Cin, kh, pad, B_blk):
    """Shapes (lane-packed layout):
    x_ref    : (B_blk, H, W*Cin)       input rows, channels packed into lanes
    band_ref : (kh*W*Cin, W*Cout)      banded conv weights (bf16)
    bias_ref : (1, W*Cout)             packed bias (f32)
    o_ref    : (B_blk, H, W*Cout)      relu(conv(x)) only (x concat in wrapper)
    xs_ref   : (B_blk*H, kh*W*Cin)     f32 scratch: kh row-shifted copies of x
    """
    WC = W * Cin
    Wout = o_ref.shape[-1]

    # Build the scratch: for output row (b, h), the K segment of vertical tap
    # dy holds input row h + dy - pad (zeros off the top/bottom edge).
    # Horizontal taps are already folded into the band, so no padding lanes.
    for b in range(B_blk):                      # static unroll, B_blk small
        r0 = b * H
        xb = x_ref[b]                           # (H, WC)
        for dy in range(kh):
            c0 = dy * WC
            lo = max(0, pad - dy)               # output rows with a valid tap
            hi = min(H, H + pad - dy)
            src_lo = lo + dy - pad
            src_hi = hi + dy - pad
            xs_ref[r0 + lo:r0 + hi, c0:c0 + WC] = xb[src_lo:src_hi, :]
            if lo > 0:                          # zero only the boundary rows
                xs_ref[r0:r0 + lo, c0:c0 + WC] = jnp.zeros((lo, WC), jnp.float32)
            if hi < H:
                xs_ref[r0 + hi:r0 + H, c0:c0 + WC] = jnp.zeros(
                    (H - hi, WC), jnp.float32)

    # Single MXU pass: (B_blk*H, kh*W*Cin) x (kh*W*Cin, W*Cout),
    # bf16 operands, f32 accumulation.  N = W*Cout is an exact 128-lane multiple.
    acc = jnp.dot(xs_ref[...].astype(jnp.bfloat16), band_ref[...],
                  preferred_element_type=jnp.float32)
    out = jnp.maximum(acc + bias_ref[...], 0.0)
    o_ref[...] = out.reshape(B_blk, H, Wout).astype(o_ref.dtype)


# ----------------------------------------------------------------------------
# Host-side weight packing: banded block-Toeplitz matrix, kh folded into K.
#   band[dy*W*Cin + wi*Cin + ci, wo*Cout + co] = w[dy, wi-wo+pad, ci, co]
# (out-of-range horizontal taps are simply left as zero -> no lane padding).
# ----------------------------------------------------------------------------
def pack_dense_block_params(w_hwio, bias, *, W):
    w_np = np.asarray(w_hwio, np.float32)       # (kh, kw, Cin, Cout)
    b_np = np.asarray(bias, np.float32).reshape(1, -1)
    kh, kw, Cin, Cout = w_np.shape
    pad = (kh - 1) // 2

    band = np.zeros((kh * W * Cin, W * Cout), np.float32)
    for wo in range(W):
        c0 = wo * Cout
        for dy in range(kh):
            for dx in range(kw):
                wi = wo + dx - pad
                if 0 <= wi < W:
                    r0 = dy * W * Cin + wi * Cin
                    band[r0:r0 + Cin, c0:c0 + Cout] = w_np[dy, dx]
    bias_packed = np.tile(b_np, (1, W))         # (1, W*Cout), wo-major co-minor
    return jnp.asarray(band, jnp.bfloat16), jnp.asarray(bias_packed, jnp.float32)


def _pick_block_batch(N, H):
    """Largest divisor of N with M = bb*H <= ~128, preferring >=2 grid steps
    (v7x has 2 TensorCores; v5e/v6e just get fewer, fatter steps)."""
    cap = max(1, 128 // H)
    divs = [d for d in range(1, N + 1) if N % d == 0]
    cands = ([d for d in divs if d <= cap and N // d >= 2]
             or [d for d in divs if d <= cap] or [1])
    return max(cands)


# ----------------------------------------------------------------------------
# Forward wrapper (NCHW in / NCHW out, matching the PyTorch module).
# ----------------------------------------------------------------------------
def dense_block_forward(x_nchw, band, bias_packed):
    N, Cin, H, W = x_nchw.shape
    K, Wout = band.shape
    Cout = Wout // W
    kh = K // (W * Cin)
    pad = (kh - 1) // 2
    assert K == kh * W * Cin and Wout == W * Cout

    B_blk = _pick_block_batch(N, H)
    grid = (N // B_blk,)

    # NCHW -> lane-packed (N, H, W*Cin) at the kernel boundary.
    # TODO(synk): for chained DenseBlocks keep activations in this packed
    # layout across blocks and only transpose at model boundaries.
    x_nhwc = jnp.transpose(x_nchw, (0, 2, 3, 1))
    x_packed = x_nhwc.reshape(N, H, W * Cin)

    kernel = functools.partial(_dense_block_kernel,
                               H=H, W=W, Cin=Cin, kh=kh, pad=pad, B_blk=B_blk)
    conv_packed = pl.pallas_call(
        kernel,
        out_shape=jax.ShapeDtypeStruct((N, H, Wout), jnp.float32),
        grid=grid,
        in_specs=[
            pl.BlockSpec((B_blk, H, W * Cin), lambda n: (n, 0, 0)),
            pl.BlockSpec((K, Wout), lambda n: (0, 0)),
            pl.BlockSpec((1, Wout), lambda n: (0, 0)),
        ],
        out_specs=pl.BlockSpec((B_blk, H, Wout), lambda n: (n, 0, 0)),
        scratch_shapes=[pltpu.VMEM((B_blk * H, K), jnp.float32)],
        compiler_params=pltpu.CompilerParams(
            dimension_semantics=("parallel",),
            vmem_limit_bytes=32 * 1024 * 1024),
    )(x_packed, band, bias_packed)

    # Bit-exact pass-through of x (outside the MXU), then back to NCHW:
    # channel order is [x channels, conv channels] == torch.cat((x, out), 1).
    conv_nhwc = conv_packed.reshape(N, H, W, Cout)
    out_nhwc = jnp.concatenate([x_nhwc, conv_nhwc], axis=-1)
    return jnp.transpose(out_nhwc, (0, 3, 1, 2))


# ----------------------------------------------------------------------------
if __name__ == "__main__":
    N, C_IN, C_OUT, H, W, K = 8, 4, 8, 16, 16, 3

    key = jax.random.PRNGKey(0)
    kx, kwgt, kb = jax.random.split(key, 3)
    x_nchw = jax.random.normal(kx, (N, C_IN, H, W), jnp.float32)
    # PyTorch Conv2d weight layout (Cout, Cin, kh, kw) -> HWIO for packing.
    w_oihw = 0.05 * jax.random.normal(kwgt, (C_OUT, C_IN, K, K), jnp.float32)
    bias = 0.01 * jax.random.normal(kb, (C_OUT,), jnp.float32)
    w_hwio = jnp.transpose(w_oihw, (2, 3, 1, 0))

    band, bias_packed = pack_dense_block_params(w_hwio, bias, W=W)

    fwd = jax.jit(dense_block_forward)
    out_nchw = fwd(x_nchw, band, bias_packed)
    jax.block_until_ready(out_nchw)

    assert out_nchw.shape == (N, C_IN + C_OUT, H, W), out_nchw.shape

    # Pure-JAX reference: Conv2d(3x3, same) + bias + ReLU, then cat((x, out), 1).
    x_nhwc = jnp.transpose(x_nchw, (0, 2, 3, 1))
    ref_conv = jax.lax.conv_general_dilated(
        x_nhwc, w_hwio, window_strides=(1, 1), padding="SAME",
        dimension_numbers=("NHWC", "HWIO", "NHWC"),
        precision=jax.lax.Precision.HIGHEST)
    ref_nhwc = jnp.concatenate(
        [x_nhwc, jnp.maximum(ref_conv + bias[None, None, None, :], 0.0)],
        axis=-1)
    ref_nchw = jnp.transpose(ref_nhwc, (0, 3, 1, 2))

    err = float(jnp.max(jnp.abs(out_nchw - ref_nchw)))
    assert err < 2e-2, f"max abs error vs reference: {err}"
    # Pass-through half must be bit-exact (x never goes through the MXU).
    assert bool(jnp.all(out_nchw[:, :C_IN] == x_nchw))
    assert bool(jnp.all(jnp.isfinite(out_nchw)))
    print("KERNEL_OK")
</pallas_src>

<mosaic_0001>
module attributes {stable_mosaic.version = 11 : i64} {
  func.func @_dense_block_kernel(%arg0: i32, %arg1: memref<4x16x64xf32, #tpu.memory_space<vmem>>, %arg2: memref<192x128xbf16, #tpu.memory_space<vmem>>, %arg3: memref<1x128xf32, #tpu.memory_space<vmem>>, %arg4: memref<4x16x128xf32, #tpu.memory_space<vmem>>, %arg5: memref<64x192xf32, #tpu.memory_space<vmem>>) attributes {dimension_semantics = [#tpu.dimension_semantics<parallel>], iteration_bounds = array<i64: 2>, scalar_prefetch = 0 : i64, scratch_operands = 1 : i64, tpu.core_type = #tpu.core_type<tc>, window_params = [{transform_indices = @transform_0, window_bounds = array<i64: 4, 16, 64>}, {pipeline_mode = #tpu.pipeline_mode<synchronous>, transform_indices = @transform_1, window_bounds = array<i64: 192, 128>}, {pipeline_mode = #tpu.pipeline_mode<synchronous>, transform_indices = @transform_2, window_bounds = array<i64: 1, 128>}, {transform_indices = @transform_3, window_bounds = array<i64: 4, 16, 128>}]} {
    %c0 = arith.constant 0 : index
    %c0_0 = arith.constant 0 : index
    %c0_1 = arith.constant 0 : index
    %0 = vector.load %arg1[%c0, %c0_0, %c0_1] : memref<4x16x64xf32, #tpu.memory_space<vmem>>, vector<1x16x64xf32>
    %1 = vector.shape_cast %0 : vector<1x16x64xf32> to vector<16x64xf32>
    %2 = vector.extract_strided_slice %1 {offsets = [0, 0], sizes = [15, 64], strides = [1, 1]} : vector<16x64xf32> to vector<15x64xf32>
    %c1 = arith.constant 1 : index
    %c0_2 = arith.constant 0 : index
    %3 = vector.load %arg5[%c1, %c0_2] : memref<64x192xf32, #tpu.memory_space<vmem>>, vector<15x64xf32>
    tpu.vector_store %arg5[%c1, %c0_2], %2 {strides = array<i32>} : memref<64x192xf32, #tpu.memory_space<vmem>>, vector<15x64xf32>,
    %cst = arith.constant 0.000000e+00 : f32
    %4 = vector.broadcast %cst : f32 to vector<1x64xf32>
    %c0_3 = arith.constant 0 : index
    %c0_4 = arith.constant 0 : index
    %5 = vector.load %arg5[%c0_3, %c0_4] : memref<64x192xf32, #tpu.memory_space<vmem>>, vector<1x64xf32>
    tpu.vector_store %arg5[%c0_3, %c0_4], %4 {strides = array<i32>} : memref<64x192xf32, #tpu.memory_space<vmem>>, vector<1x64xf32>,
    %c0_5 = arith.constant 0 : index
    %c64 = arith.constant 64 : index
    %6 = vector.load %arg5[%c0_5, %c64] : memref<64x192xf32, #tpu.memory_space<vmem>>, vector<16x64xf32>
    tpu.vector_store %arg5[%c0_5, %c64], %1 {strides = array<i32>} : memref<64x192xf32, #tpu.memory_space<vmem>>, vector<16x64xf32>,
    %7 = vector.extract_strided_slice %1 {offsets = [1, 0], sizes = [15, 64], strides = [1, 1]} : vector<16x64xf32> to vector<15x64xf32>
    %c0_6 = arith.constant 0 : index
    %c128 = arith.constant 128 : index
    %8 = vector.load %arg5[%c0_6, %c128] : memref<64x192xf32, #tpu.memory_space<vmem>>, vector<15x64xf32>
    tpu.vector_store %arg5[%c0_6, %c128], %7 {strides = array<i32>} : memref<64x192xf32, #tpu.memory_space<vmem>>, vector<15x64xf32>,
    %cst_7 = arith.constant 0.000000e+00 : f32
    %9 = vector.broadcast %cst_7 : f32 to vector<1x64xf32>
    %c15 = arith.constant 15 : index
    %c128_8 = arith.constant 128 : index
    %10 = vector.load %arg5[%c15, %c128_8] : memref<64x192xf32, #tpu.memory_space<vmem>>, vector<1x64xf32>
    tpu.vector_store %arg5[%c15, %c128_8], %9 {strides = array<i32>} : memref<64x192xf32, #tpu.memory_space<vmem>>, vector<1x64xf32>,
    %c1_9 = arith.constant 1 : index
    %c0_10 = arith.constant 0 : index
    %c0_11 = arith.constant 0 : index
    %11 = vector.load %arg1[%c1_9, %c0_10, %c0_11] : memref<4x16x64xf32, #tpu.memory_space<vmem>>, vector<1x16x64xf32>
    %12 = vector.shape_cast %11 : vector<1x16x64xf32> to vector<16x64xf32>
    %13 = vector.extract_strided_slice %12 {offsets = [0, 0], sizes = [15, 64], strides = [1, 1]} : vector<16x64xf32> to vector<15x64xf32>
    %c17 = arith.constant 17 : index
    %c0_12 = arith.constant 0 : index
    %14 = vector.load %arg5[%c17, %c0_12] : memref<64x192xf32, #tpu.memory_space<vmem>>, vector<15x64xf32>
    tpu.vector_store %arg5[%c17, %c0_12], %13 {strides = array<i32>} : memref<64x192xf32, #tpu.memory_space<vmem>>, vector<15x64xf32>,
    %cst_13 = arith.constant 0.000000e+00 : f32
    %15 = vector.broadcast %cst_13 : f32 to vector<1x64xf32>
    %c16 = arith.constant 16 : index
    %c0_14 = arith.constant 0 : index
    %16 = vector.load %arg5[%c16, %c0_14] : memref<64x192xf32, #tpu.memory_space<vmem>>, vector<1x64xf32>
    tpu.vector_store %arg5[%c16, %c0_14], %15 {strides = array<i32>} : memref<64x192xf32, #tpu.memory_space<vmem>>, vector<1x64xf32>,
    %c16_15 = arith.constant 16 : index
    %c64_16 = arith.constant 64 : index
    %17 = vector.load %arg5[%c16_15, %c64_16] : memref<64x192xf32, #tpu.memory_space<vmem>>, vector<16x64xf32>
    tpu.vector_store %arg5[%c16_15, %c64_16], %12 {strides = array<i32>} : memref<64x192xf32, #tpu.memory_space<vmem>>, vector<16x64xf32>,
    %18 = vector.extract_strided_slice %12 {offsets = [1, 0], sizes = [15, 64], strides = [1, 1]} : vector<16x64xf32> to vector<15x64xf32>
    %c16_17 = arith.constant 16 : index
    %c128_18 = arith.constant 128 : index
    %19 = vector.load %arg5[%c16_17, %c128_18] : memref<64x192xf32, #tpu.memory_space<vmem>>, vector<15x64xf32>
    tpu.vector_store %arg5[%c16_17, %c128_18], %18 {strides = array<i32>} : memref<64x192xf32, #tpu.memory_space<vmem>>, vector<15x64xf32>,
    %cst_19 = arith.constant 0.000000e+00 : f32
    %20 = vector.broadcast %cst_19 : f32 to vector<1x64xf32>
    %c31 = arith.constant 31 : index
    %c128_20 = arith.constant 128 : index
    %21 = vector.load %arg5[%c31, %c128_20] : memref<64x192xf32, #tpu.memory_space<vmem>>, vector<1x64xf32>
    tpu.vector_store %arg5[%c31, %c128_20], %20 {strides = array<i32>} : memref<64x192xf32, #tpu.memory_space<vmem>>, vector<1x64xf32>,
    %c2 = arith.constant 2 : index
    %c0_21 = arith.constant 0 : index
    %c0_22 = arith.constant 0 : index
    %22 = vector.load %arg1[%c2, %c0_21, %c0_22] : memref<4x16x64xf32, #tpu.memory_space<vmem>>, vector<1x16x64xf32>
    %23 = vector.shape_cast %22 : vector<1x16x64xf32> to vector<16x64xf32>
    %24 = vector.extract_strided_slice %23 {offsets = [0, 0], sizes = [15, 64], strides = [1, 1]} : vector<16x64xf32> to vector<15x64xf32>
    %c33 = arith.constant 33 : index
    %c0_23 = arith.constant 0 : index
    %25 = vector.load %arg5[%c33, %c0_23] : memref<64x192xf32, #tpu.memory_space<vmem>>, vector<15x64xf32>
    tpu.vector_store %arg5[%c33, %c0_23], %24 {strides = array<i32>} : memref<64x192xf32, #tpu.memory_space<vmem>>, vector<15x64xf32>,
    %cst_24 = arith.constant 0.000000e+00 : f32
    %26 = vector.broadcast %cst_24 : f32 to vector<1x64xf32>
    %c32 = arith.constant 32 : index
    %c0_25 = arith.constant 0 : index
    %27 = vector.load %arg5[%c32, %c0_25] : memref<64x192xf32, #tpu.memory_space<vmem>>, vector<1x64xf32>
    tpu.vector_store %arg5[%c32, %c0_25], %26 {strides = array<i32>} : memref<64x192xf32, #tpu.memory_space<vmem>>, vector<1x64xf32>,
    %c32_26 = arith.constant 32 : index
    %c64_27 = arith.constant 64 : index
    %28 = vector.load %arg5[%c32_26, %c64_27] : memref<64x192xf32, #tpu.memory_space<vmem>>, vector<16x64xf32>
    tpu.vector_store %arg5[%c32_26, %c64_27], %23 {strides = array<i32>} : memref<64x192xf32, #tpu.memory_space<vmem>>, vector<16x64xf32>,
    %29 = vector.extract_strided_slice %23 {offsets = [1, 0], sizes = [15, 64], strides = [1, 1]} : vector<16x64xf32> to vector<15x64xf32>
    %c32_28 = arith.constant 32 : index
    %c128_29 = arith.constant 128 : index
    %30 = vector.load %arg5[%c32_28, %c128_29] : memref<64x192xf32, #tpu.memory_space<vmem>>, vector<15x64xf32>
    tpu.vector_store %arg5[%c32_28, %c128_29], %29 {strides = array<i32>} : memref<64x192xf32, #tpu.memory_space<vmem>>, vector<15x64xf32>,
    %cst_30 = arith.constant 0.000000e+00 : f32
    %31 = vector.broadcast %cst_30 : f32 to vector<1x64xf32>
    %c47 = arith.constant 47 : index
    %c128_31 = arith.constant 128 : index
    %32 = vector.load %arg5[%c47, %c128_31] : memref<64x192xf32, #tpu.memory_space<vmem>>, vector<1x64xf32>
    tpu.vector_store %arg5[%c47, %c128_31], %31 {strides = array<i32>} : memref<64x192xf32, #tpu.memory_space<vmem>>, vector<1x64xf32>,
    %c3 = arith.constant 3 : index
    %c0_32 = arith.constant 0 : index
    %c0_33 = arith.constant 0 : index
    %33 = vector.load %arg1[%c3, %c0_32, %c0_33] : memref<4x16x64xf32, #tpu.memory_space<vmem>>, vector<1x16x64xf32>
    %34 = vector.shape_cast %33 : vector<1x16x64xf32> to vector<16x64xf32>
    %35 = vector.extract_strided_slice %34 {offsets = [0, 0], sizes = [15, 64], strides = [1, 1]} : vector<16x64xf32> to vector<15x64xf32>
    %c49 = arith.constant 49 : index
    %c0_34 = arith.constant 0 : index
    %36 = vector.load %arg5[%c49, %c0_34] : memref<64x192xf32, #tpu.memory_space<vmem>>, vector<15x64xf32>
    tpu.vector_store %arg5[%c49, %c0_34], %35 {strides = array<i32>} : memref<64x192xf32, #tpu.memory_space<vmem>>, vector<15x64xf32>,
    %cst_35 = arith.constant 0.000000e+00 : f32
    %37 = vector.broadcast %cst_35 : f32 to vector<1x64xf32>
    %c48 = arith.constant 48 : index
    %c0_36 = arith.constant 0 : index
    %38 = vector.load %arg5[%c48, %c0_36] : memref<64x192xf32, #tpu.memory_space<vmem>>, vector<1x64xf32>
    tpu.vector_store %arg5[%c48, %c0_36], %37 {strides = array<i32>} : memref<64x192xf32, #tpu.memory_space<vmem>>, vector<1x64xf32>,
    %c48_37 = arith.constant 48 : index
    %c64_38 = arith.constant 64 : index
    %39 = vector.load %arg5[%c48_37, %c64_38] : memref<64x192xf32, #tpu.memory_space<vmem>>, vector<16x64xf32>
    tpu.vector_store %arg5[%c48_37, %c64_38], %34 {strides = array<i32>} : memref<64x192xf32, #tpu.memory_space<vmem>>, vector<16x64xf32>,
    %40 = vector.extract_strided_slice %34 {offsets = [1, 0], sizes = [15, 64], strides = [1, 1]} : vector<16x64xf32> to vector<15x64xf32>
    %c48_39 = arith.constant 48 : index
    %c128_40 = arith.constant 128 : index
    %41 = vector.load %arg5[%c48_39, %c128_40] : memref<64x192xf32, #tpu.memory_space<vmem>>, vector<15x64xf32>
    tpu.vector_store %arg5[%c48_39, %c128_40], %40 {strides = array<i32>} : memref<64x192xf32, #tpu.memory_space<vmem>>, vector<15x64xf32>,
    %cst_41 = arith.constant 0.000000e+00 : f32
    %42 = vector.broadcast %cst_41 : f32 to vector<1x64xf32>
    %c63 = arith.constant 63 : index
    %c128_42 = arith.constant 128 : index
    %43 = vector.load %arg5[%c63, %c128_42] : memref<64x192xf32, #tpu.memory_space<vmem>>, vector<1x64xf32>
    tpu.vector_store %arg5[%c63, %c128_42], %42 {strides = array<i32>} : memref<64x192xf32, #tpu.memory_space<vmem>>, vector<1x64xf32>,
    %c0_43 = arith.constant 0 : index
    %c0_44 = arith.constant 0 : index
    %44 = vector.load %arg5[%c0_43, %c0_44] : memref<64x192xf32, #tpu.memory_space<vmem>>, vector<64x192xf32>
    %45 = arith.truncf %44 : vector<64x192xf32> to vector<64x192xbf16>
    %c0_45 = arith.constant 0 : index
    %c0_46 = arith.constant 0 : index
    %46 = vector.load %arg2[%c0_45, %c0_46] : memref<192x128xbf16, #tpu.memory_space<vmem>>, vector<192x128xbf16>
    %cst_47 = arith.constant dense<0.000000e+00> : vector<64x128xf32>
    %47 = tpu.matmul %45, %46, %cst_47 {dimension_numbers = #tpu.dot_dimension_numbers<[1], [0], [0], [1], [0, 0, 1, 1], [], []>} : vector<64x192xbf16>, vector<192x128xbf16>, vector<64x128xf32> -> vector<64x128xf32>
    %c0_48 = arith.constant 0 : index
    %c0_49 = arith.constant 0 : index
    %48 = vector.load %arg3[%c0_48, %c0_49] : memref<1x128xf32, #tpu.memory_space<vmem>>, vector<1x128xf32>
    %49 = vector.broadcast %48 : vector<1x128xf32> to vector<64x128xf32>
    %50 = arith.addf %47, %49 : vector<64x128xf32>
    %cst_50 = arith.constant 0.000000e+00 : f32
    %51 = vector.broadcast %cst_50 : f32 to vector<64x128xf32>
    %52 = arith.maximumf %50, %51 : vector<64x128xf32>
    %53 = vector.shape_cast %52 : vector<64x128xf32> to vector<4x16x128xf32>
    %c0_51 = arith.constant 0 : index
    %c0_52 = arith.constant 0 : index
    %c0_53 = arith.constant 0 : index
    %54 = vector.load %arg4[%c0_51, %c0_52, %c0_53] : memref<4x16x128xf32, #tpu.memory_space<vmem>>, vector<4x16x128xf32>
    tpu.vector_store %arg4[%c0_51, %c0_52, %c0_53], %53 {strides = array<i32>} : memref<4x16x128xf32, #tpu.memory_space<vmem>>, vector<4x16x128xf32>,
    return
  }
  func.func @transform_0(%arg0: i32) -> (i32, i32, i32) {
    %c0_i32 = arith.constant 0 : i32
    %c0_i32_0 = arith.constant 0 : i32
    %c0_i32_1 = arith.constant 0 : i32
    return %arg0, %c0_i32, %c0_i32_0 : i32, i32, i32
  }
  func.func @transform_1(%arg0: i32) -> (i32, i32) {
    %c0_i32 = arith.constant 0 : i32
    %c0_i32_0 = arith.constant 0 : i32
    %c0_i32_1 = arith.constant 0 : i32
    return %c0_i32, %c0_i32_0 : i32, i32
  }
  func.func @transform_2(%arg0: i32) -> (i32, i32) {
    %c0_i32 = arith.constant 0 : i32
    %c0_i32_0 = arith.constant 0 : i32
    %c0_i32_1 = arith.constant 0 : i32
    return %c0_i32, %c0_i32_0 : i32, i32
  }
  func.func @transform_3(%arg0: i32) -> (i32, i32, i32) {
    %c0_i32 = arith.constant 0 : i32
    %c0_i32_0 = arith.constant 0 : i32
    %c0_i32_1 = arith.constant 0 : i32
    return %arg0, %c0_i32, %c0_i32_0 : i32, i32, i32
  }
}

</mosaic_0001>

<bundles_post_ra>
// kernel: dense_block_forward.1
= control target key start
LH: loop header
LB: loop body
LE: loop exit
PB: predicated region body
PF: predicated region fallthrough
CT: control target
= control target key end

     0   :  { %s696_s12 = smov 0   ;;  %s855_s0 = inlined_call_operand.vmem [shape: f32[8,16,64], index: 0, kind: input, shape index: {}]   ;;  %s856_s1 = inlined_call_operand.vmem [shape: bf16[192,128], index: 1, kind: input, shape index: {}]   ;;  %s857_s2 = inlined_call_operand.vmem [shape: f32[1,128], index: 2, kind: input, shape index: {}]   ;;  %s858_s3 = inlined_call_operand.vmem [shape: f32[8,16,128], index: 3, kind: output, shape index: {}]  }
   0x1 LB: > { %s580_s13 = sadd.s32 4294967295, %s671_s12   ;;  %p584_p0 = scmp.ge.s32.totalorder %s671_s12, 1  ;;  %s671_s12 = sphi %s696_s12, %s13_s12  }
   0x2   : > { %p139_p1 = scmp.lt.s32.totalorder %s671_s12, 3 }
   0x4   : > { %p140_p2 = pnand %p584_p0, %p139_p1 }
   0x5   : > { %s585_s14 = sshll.u32 (!%p140_p2), %s580_s13, 2  ;;  %s675_s25 = smov (!%p140_p2), 64  }
   0x6   : > { %143 = sbr.rel (%p140_p2) target bundleno = 355 (0x163), region = 32  ;;  %p166_p3 = scmp.lt.s32.totalorder (!%p140_p2), %s585_s14, 7 }
   0xb   : > { %v673_v0 = vmov 0   ;;  %v653_v1 = vld [vmem:[%s856_s1 + $0x38] sm:$0xff]   ;;  %vm194_vm0 = vcmask 516096   ;;  %s860_s14 = smov (!%p166_p3, %s585_s14), 7  ;;  %v654_v2 = vld [vmem:[%s856_s1 + $0x30] sm:$0xff]   ;;  %v674_v3 = vmov 0.0  }
   0xc   : > { %441 = vmatprep.subr.bf16.mxu0 %v673_v0  ;;  %618 = vmatprep.subr.bf16.mxu1 %v673_v0  ;;  %s616_s17 = sshll.u32 %s860_s14, 4  ;;  %243 = vst.msk [vmem:[#allocation2 + $0x3f] sm:$0x1] %vm194_vm0, %v674_v3  ;;  %256 = vst.msk [vmem:[#allocation2 + $0x40] sm:$0x1] %vm194_vm0, %v674_v3  ;;  %vm190_vm1 = vcmask 523265  }
   0xd   : > { %442 = vmatpush1.bf16.msra.mxu0 %v653_v1  ;;  %630 = vmatpush1.bf16.msra.mxu1 %v653_v1  ;;  %301 = vst.msk [vmem:[#allocation2 + $0x7f] sm:$0x1] %vm194_vm0, %v674_v3  ;;  %195 = vst.msk [vmem:[#allocation2] sm:$0x1] %vm194_vm0, %v674_v3  ;;  %s730_s22 = scalar_lea.vmem %s855_s0, %s616_s17  ;;  %vm192_vm2 = vcmask 523264   ;;  %vm205_vm3 = vcmask 1046528   ;;  %s842_s24 = scalar_lea.vmem %s858_s3, %s616_s17 }
   0xe   : > { %443 = vmatprep.subr.bf16.mxu0 %v673_v0  ;;  %619 = vmatprep.subr.bf16.mxu1 %v673_v0  ;;  %214 = vst.msk [vmem:[#allocation2 + $0x1f] sm:$0x1] %vm194_vm0, %v674_v3  ;;  %227 = vst.msk [vmem:[#allocation2 + $0x20] sm:$0x1] %vm194_vm0, %v674_v3  ;;  %v593_v4 = vld [vmem:[%s730_s22 + $0x20] sm:$0xff]  ;;  %vm212_vm4 = vcmask 522240  }
   0xf   : > { %272 = vst.msk [vmem:[#allocation2 + $0x5f] sm:$0x1] %vm194_vm0, %v674_v3  ;;  %285 = vst.msk [vmem:[#allocation2 + $0x60] sm:$0x1] %vm194_vm0, %v674_v3  ;;  %v180_v5 = vld [vmem:[%s730_s22] sm:$0xff]  ;;  %v655_v6 = vld [vmem:[%s856_s1 + $0x28] sm:$0xff]   ;;  %257 = vrot.lane.b32.xlu1 %v593_v4, %s675_s25 }
  0x10   : > { %vm184_vm5 = vcmask 1040384   ;;  %v249_v7 = vrot.slane %v593_v4, 7  ;;  %v265_v8 = vrot.slane %v593_v4, 1  ;;  %196 = vrot.lane.b32.xlu0 %v180_v5, %s675_s25  ;;  %v185_v9 = vrot.slane %v180_v5, 7  ;;  %v594_v11 = vld [vmem:[%s730_s22 + $0x28] sm:$0xff]  ;;  %v592_v17 = vld [vmem:[%s730_s22 + $0x18] sm:$0xff] }
  0x11   : > { %v206_v10 = vrot.slane %v180_v5, 1  ;;  %v181_v12 = vld [vmem:[%s730_s22 + $0x8] sm:$0xff]  ;;  %v250_v13 = vrot.slane %v594_v11, 7  ;;  %v266_v14 = vrot.slane %v594_v11, 1  ;;  %v591_v18 = vld [vmem:[%s730_s22 + $0x10] sm:$0xff]  ;;  %444 = vmatpush1.bf16.msra.mxu0 %v654_v2  ;;  %631 = vmatpush1.bf16.msra.mxu1 %v654_v2  ;;  %v221_v19 = vrot.slane %v592_v17, 7 }
  0x12   : > { %v186_v15 = vrot.slane %v181_v12, 7  ;;  %v207_v16 = vrot.slane %v181_v12, 1  ;;  %254 = vst.msk [vmem:[#allocation2 + $0x40] sm:$0xfe] %vm190_vm1, %v249_v7  ;;  %191 = vst.msk [vmem:[#allocation2] sm:$0xfe] %vm190_vm1, %v185_v9  ;;  %445 = vmatprep.subr.bf16.mxu0 %v673_v0  ;;  %620 = vmatprep.subr.bf16.mxu1 %v673_v0 }
  0x13   : > { %v237_v20 = vrot.slane %v592_v17, 1  ;;  %v220_v21 = vrot.slane %v591_v18, 7  ;;  %v236_v22 = vrot.slane %v591_v18, 1  ;;  %v596_v23 = vld [vmem:[%s730_s22 + $0x38] sm:$0xff]  ;;  %v595_v24 = vld [vmem:[%s730_s22 + $0x30] sm:$0xff]  ;;  %v267_v25 = vsel %vm205_vm3, %v265_v8, %v266_v14  ;;  %259 = vrot.lane.b32.xlu1 %v594_v11, %s675_s25  ;;  %v656_v33 = vld [vmem:[%s856_s1 + $0x20] sm:$0xff]  }
  0x14   : > { %271 = vst.msk [vmem:[#allocation2 + $0x58] sm:$0x7f] %vm212_vm4, %v266_v14  ;;  %213 = vst.msk [vmem:[#allocation2 + $0x18] sm:$0x7f] %vm212_vm4, %v207_v16  ;;  %v208_v26 = vsel %vm205_vm3, %v206_v10, %v207_v16  ;;  %v279_v27 = vrot.slane %v596_v23, 7  ;;  %v295_v28 = vrot.slane %v596_v23, 1  ;;  %198 = vrot.lane.b32.xlu0 %v181_v12, %s675_s25  ;;  %v251_v32 = vsel %vm184_vm5, %v249_v7, %v250_v13 }
  0x15   : > { %270 = vst.msk [vmem:[#allocation2 + $0x48] sm:$0xff] %vm192_vm2, %v267_v25  ;;  %211 = vst.msk [vmem:[#allocation2 + $0x8] sm:$0xff] %vm192_vm2, %v208_v26  ;;  %v238_v29 = vsel %vm205_vm3, %v236_v22, %v237_v20  ;;  %v278_v30 = vrot.slane %v595_v24, 7  ;;  %v294_v31 = vrot.slane %v595_v24, 1  ;;  %446 = vmatpush1.bf16.msra.mxu0 %v655_v6  ;;  %632 = vmatpush1.bf16.msra.mxu1 %v655_v6  ;;  %v657_v38 = vld [vmem:[%s856_s1 + $0x18] sm:$0xff]   ;;  %v658_v45 = vld [vmem:[%s856_s1 + $0x10] sm:$0xff]  }
  0x16   : > { %242 = vst.msk [vmem:[#allocation2 + $0x38] sm:$0x7f] %vm212_vm4, %v237_v20  ;;  %300 = vst.msk [vmem:[#allocation2 + $0x78] sm:$0x7f] %vm212_vm4, %v295_v28  ;;  %v187_v34 = vsel %vm184_vm5, %v185_v9, %v186_v15  ;;  %v222_v35 = vsel %vm184_vm5, %v220_v21, %v221_v19  ;;  %447 = vmatprep.subr.bf16.mxu0 %v673_v0  ;;  %621 = vmatprep.subr.bf16.mxu1 %v673_v0  ;;  %v659_v46 = vld [vmem:[%s856_s1 + $0x8] sm:$0xff]   ;;  %v660_v47 = vld [vmem:[%s856_s1] sm:$0xff]  }
  0x17   : > { %225 = vst.msk [vmem:[#allocation2 + $0x20] sm:$0xfe] %vm190_vm1, %v220_v21  ;;  %283 = vst.msk [vmem:[#allocation2 + $0x60] sm:$0xfe] %vm190_vm1, %v278_v30  ;;  %v296_v36 = vsel %vm205_vm3, %v294_v31, %v295_v28  ;;  %v280_v37 = vsel %vm184_vm5, %v278_v30, %v279_v27  ;;  %230 = vrot.lane.b32.xlu1 %v592_v17, %s675_s25  ;;  %v661_v48 = vld [vmem:[%s856_s1 + $0x58] sm:$0xff]   ;;  %v662_v49 = vld [vmem:[%s856_s1 + $0x50] sm:$0xff]  }
  0x18   : > { %241 = vst.msk [vmem:[#allocation2 + $0x28] sm:$0xff] %vm192_vm2, %v238_v29  ;;  %255 = vst.msk [vmem:[#allocation2 + $0x50] sm:$0xff] %vm192_vm2, %v251_v32  ;;  %228 = vrot.lane.b32.xlu0 %v591_v18, %s675_s25  ;;  %v663_v50 = vld [vmem:[%s856_s1 + $0x48] sm:$0xff]   ;;  %v664_v51 = vld [vmem:[%s856_s1 + $0x40] sm:$0xff]   ;;  %vm202_vm6 = vcmask 1048064  }
  0x19   : > { %193 = vst.msk [vmem:[#allocation2 + $0x10] sm:$0xff] %vm192_vm2, %v187_v34  ;;  %226 = vst.msk [vmem:[#allocation2 + $0x30] sm:$0xff] %vm192_vm2, %v222_v35  ;;  %448 = vmatpush1.bf16.msra.mxu0 %v656_v33  ;;  %633 = vmatpush1.bf16.msra.mxu1 %v656_v33  ;;  %v597_v14 = vld [vmem:[%s857_s2] ss:$0 sm:$0xff] }
  0x1a   : > { %299 = vst.msk [vmem:[#allocation2 + $0x68] sm:$0xff] %vm192_vm2, %v296_v36  ;;  %284 = vst.msk [vmem:[#allocation2 + $0x70] sm:$0xff] %vm192_vm2, %v280_v37  ;;  %449 = vmatprep.subr.bf16.mxu0 %v673_v0  ;;  %622 = vmatprep.subr.bf16.mxu1 %v673_v0 }
  0x1b   : > { %v305_v39 = vld [vmem:[#allocation2 + $0x18] sm:$0xff]  ;;  %288 = vrot.lane.b32.xlu1 %v596_v23, %s675_s25 }
  0x1c   : > { %v313_v40 = vld [vmem:[#allocation2 + $0x58] sm:$0xff]  ;;  %v303_v41 = vld [vmem:[#allocation2 + $0x8] sm:$0xff]  ;;  %286 = vrot.lane.b32.xlu0 %v595_v24, %s675_s25 }
  0x1d   : > { %v311_v42 = vld [vmem:[#allocation2 + $0x48] sm:$0xff]  ;;  %v319_v43 = vpack.c.bf16 %v305_v39, %v303_v41  ;;  %450 = vmatpush1.bf16.msra.mxu0 %v657_v38  ;;  %634 = vmatpush1.bf16.msra.mxu1 %v657_v38  ;;  %v309_v58 = vld [vmem:[#allocation2 + $0x38] sm:$0xff] }
  0x1e   : > { %v323_v44 = vpack.c.bf16 %v313_v40, %v311_v42  ;;  %451 = vmatprep.subr.bf16.mxu0 %v673_v0  ;;  %623 = vmatprep.subr.bf16.mxu1 %v673_v0  ;;  %v317_v61 = vld [vmem:[#allocation2 + $0x78] sm:$0xff] }
  0x1f   : > { %610 = vmatprep.mubr.msk.bf16.mxu0 %vm192_vm2, %v319_v43  ;;  %v307_v59 = vld [vmem:[#allocation2 + $0x28] sm:$0xff] }
  0x20   : > { %612 = vmatprep.mubr.msk.bf16.mxu1 %vm192_vm2, %v323_v44  ;;  %v321_v4 = vpack.c.bf16 %v309_v58, %v307_v59 }
  0x21   : > { %452 = vmatpush1.bf16.msra.mxu0 %v658_v45  ;;  %635 = vmatpush1.bf16.msra.mxu1 %v658_v45  ;;  %v315_v60 = vld [vmem:[#allocation2 + $0x68] sm:$0xff] }
  0x22   : > { %453 = vmatprep.subr.bf16.mxu0 %v673_v0  ;;  %624 = vmatprep.subr.bf16.mxu1 %v673_v0  ;;  %v325_v5 = vpack.c.bf16 %v317_v61, %v315_v60 }
  0x25   : > { %454 = vmatpush1.bf16.msra.mxu0 %v659_v46  ;;  %636 = vmatpush1.bf16.msra.mxu1 %v659_v46 }
  0x26   : > { %455 = vmatprep.subr.bf16.mxu0 %v673_v0  ;;  %625 = vmatprep.subr.bf16.mxu1 %v673_v0 }
  0x29   : > { %456 = vmatpush1.bf16.msra.mxu0 %v660_v47  ;;  %637 = vmatpush1.bf16.msra.mxu1 %v660_v47 }
  0x2a   : > { %465 = vmatprep.subr.bf16.mxu0 %v673_v0  ;;  %626 = vmatprep.subr.bf16.mxu1 %v673_v0 }
  0x2d   : > { %466 = vmatpush2.bf16.msra.mxu0 %v661_v48  ;;  %638 = vmatpush2.bf16.msra.mxu1 %v661_v48 }
  0x2e   : > { %467 = vmatprep.subr.bf16.mxu0 %v673_v0  ;;  %627 = vmatprep.subr.bf16.mxu1 %v673_v0 }
  0x31   : > { %468 = vmatpush2.bf16.msra.mxu0 %v662_v49  ;;  %639 = vmatpush2.bf16.msra.mxu1 %v662_v49 }
  0x32   : > { %469 = vmatprep.subr.bf16.mxu0 %v673_v0  ;;  %628 = vmatprep.subr.bf16.mxu1 %v673_v0 }
  0x35   : > { %470 = vmatpush2.bf16.msra.mxu0 %v663_v50  ;;  %640 = vmatpush2.bf16.msra.mxu1 %v663_v50 }
  0x36   : > { %471 = vmatprep.subr.bf16.mxu0 %v673_v0  ;;  %629 = vmatprep.subr.bf16.mxu1 %v673_v0 }
  0x39   : > { %472 = vmatpush2.bf16.msra.mxu0 %v664_v51  ;;  %641 = vmatpush2.bf16.msra.mxu1 %v664_v51 }
  0x81   : > { %v258_v52 = vpop.permute.xlu1 %257 }
  0x82   : > { %v197_v53 = vpop.permute.xlu0 %196  ;;  %263 = vst.msk [vmem:[#allocation2 + $0x40] sm:$0xff] %vm202_vm6, %v258_v52 }
  0x83   : > { %203 = vst.msk [vmem:[#allocation2] sm:$0xff] %vm202_vm6, %v197_v53 }
  0x85   : > { %v260_v54 = vpop.permute.xlu1 %259 }
  0x86   : > { %v199_v55 = vpop.permute.xlu0 %198  ;;  %264 = vst.msk [vmem:[#allocation2 + $0x50] sm:$0xff] %vm202_vm6, %v260_v54 }
  0x87   : > { %204 = vst.msk [vmem:[#allocation2 + $0x10] sm:$0xff] %vm202_vm6, %v199_v55 }
  0x89   : > { %v231_v56 = vpop.permute.xlu1 %230  ;;  %v310_v2 = vld [vmem:[#allocation2 + $0x40] sm:$0xff] }
  0x8a   : > { %v229_v57 = vpop.permute.xlu0 %228  ;;  %235 = vst.msk [vmem:[#allocation2 + $0x30] sm:$0xff] %vm202_vm6, %v231_v56  ;;  %v302_v62 = vld [vmem:[#allocation2] sm:$0xff] }
  0x8b   : > { %234 = vst.msk [vmem:[#allocation2 + $0x20] sm:$0xff] %vm202_vm6, %v229_v57 }
  0x8d   : > { %v289_v63 = vpop.permute.xlu1 %288  ;;  %v312_v3 = vld [vmem:[#allocation2 + $0x50] sm:$0xff] }
  0x8e   : > { %v287_v0 = vpop.permute.xlu0 %286  ;;  %v304_v1 = vld [vmem:[#allocation2 + $0x10] sm:$0xff]  ;;  %293 = vst.msk [vmem:[#allocation2 + $0x70] sm:$0xff] %vm202_vm6, %v289_v63  ;;  %v322_v7 = vpack.c.bf16 %v312_v3, %v310_v2 }
  0x8f   : > { %292 = vst.msk [vmem:[#allocation2 + $0x60] sm:$0xff] %vm202_vm6, %v287_v0  ;;  %v318_v6 = vpack.c.bf16 %v304_v1, %v302_v62 }
  0x90   : > { %490 = vmatmul.mubr.bf16.vlgmr.msra.gmra.mxu1 %v322_v7 }
  0x91   : > { %474 = vmatmul.mubr.bf16.vlgmr.msra.gmra.mxu0 %v318_v6  ;;  %613 = vmatprep.mubr.msk.bf16.mxu1 %vm192_vm2, %v325_v5  ;;  %v308_v9 = vld [vmem:[#allocation2 + $0x30] sm:$0xff] }
  0x92   : > { %611 = vmatprep.mubr.msk.bf16.mxu0 %vm192_vm2, %v321_v4  ;;  %v306_v8 = vld [vmem:[#allocation2 + $0x20] sm:$0xff] }
  0x93   : > { %v320_v12 = vpack.c.bf16 %v308_v9, %v306_v8 }
  0x95   : > { %v316_v11 = vld [vmem:[#allocation2 + $0x70] sm:$0xff] }
  0x96   : > { %v314_v10 = vld [vmem:[#allocation2 + $0x60] sm:$0xff] }
  0x97   : > { %v324_v13 = vpack.c.bf16 %v316_v11, %v314_v10 }
  0x99   : > { %482 = vmatmul.mubr.bf16.gmra.mxu0 %v320_v12  ;;  %498 = vmatmul.mubr.bf16.gmra.mxu1 %v324_v13 }
 0x150   : > { %v491_v16 = vpop.f32.mrf.mxu1 }
 0x151   : > { %v475_v15 = vpop.f32.mrf.mxu0  ;;  %v492_v27 = vadd.f32 %v597_v14, %v491_v16 }
 0x152   : > { %v476_v17 = vadd.f32 %v597_v14, %v475_v15  ;;  %v493_v19 = vpop.f32.mrf.mxu1 }
 0x153   : > { %v477_v18 = vpop.f32.mrf.mxu0  ;;  %v510_v36 = vmax.f32 %v492_v27, 0.0 }
 0x154   : > { %v506_v20 = vmax.f32 %v476_v17, 0.0  ;;  %v494_v22 = vpop.f32.mrf.mxu1 }
 0x155   : > { %v478_v21 = vpop.f32.mrf.mxu0  ;;  %v495_v37 = vadd.f32 %v597_v14, %v494_v22  ;;  %518 = vst [vmem:[%s842_s24 + $0x20] sm:$0xff] %v510_v36 }
 0x156   : > { %514 = vst [vmem:[%s842_s24] sm:$0xff] %v506_v20  ;;  %v479_v23 = vadd.f32 %v597_v14, %v478_v21  ;;  %v496_v25 = vpop.f32.mrf.mxu1 }
 0x157   : > { %v480_v24 = vpop.f32.mrf.mxu0  ;;  %v511_v45 = vmax.f32 %v495_v37, 0.0 }
 0x158   : > { %v507_v26 = vmax.f32 %v479_v23, 0.0 }
 0x159   : > { %v483_v28 = vpop.f32.mrf.mxu0  ;;  %v499_v29 = vpop.f32.mrf.mxu1  ;;  %519 = vst [vmem:[%s842_s24 + $0x28] sm:$0xff] %v511_v45 }
 0x15a   : > { %515 = vst [vmem:[%s842_s24 + $0x8] sm:$0xff] %v507_v26  ;;  %v484_v30 = vadd.f32 %v597_v14, %v483_v28  ;;  %v500_v31 = vadd.f32 %v597_v14, %v499_v29 }
 0x15b   : > { %v485_v32 = vpop.f32.mrf.mxu0  ;;  %v501_v33 = vpop.f32.mrf.mxu1 }
 0x15c   : > { %v508_v34 = vmax.f32 %v484_v30, 0.0  ;;  %v512_v35 = vmax.f32 %v500_v31, 0.0 }
 0x15d   : > { %v486_v38 = vpop.f32.mrf.mxu0  ;;  %v502_v39 = vpop.f32.mrf.mxu1 }
 0x15e   : > { %516 = vst [vmem:[%s842_s24 + $0x10] sm:$0xff] %v508_v34  ;;  %v487_v40 = vadd.f32 %v597_v14, %v486_v38  ;;  %v503_v41 = vadd.f32 %v597_v14, %v502_v39  ;;  %520 = vst [vmem:[%s842_s24 + $0x30] sm:$0xff] %v512_v35 }
 0x15f   : > { %v488_v42 = vpop.f32.mrf.mxu0  ;;  %v504_v43 = vpop.f32.mrf.mxu1 }
 0x160   : > { %v509_v44 = vmax.f32 %v487_v40, 0.0  ;;  %v513_v46 = vmax.f32 %v503_v41, 0.0 }
 0x162   : > { %517 = vst [vmem:[%s842_s24 + $0x18] sm:$0xff] %v509_v44  ;;  %521 = vst [vmem:[%s842_s24 + $0x38] sm:$0xff] %v513_v46 }
 0x163 PF: > { %s13_s12 = sadd.s32 1, %s671_s12  }
 0x164   : > { %p10_p4 = scmp.ge.s32.totalorder %s13_s12, 4  }
 0x166   :  { %12 = sbr.rel (!%p10_p4) target bundleno = 1 (0x1), region = 65 }

</bundles_post_ra>
